<compile_context>
chip_gen: v7x
topology: tpu7x:2x2x1
jax: 0.10.0
libtpu: 0.0.40
codegen_flags: <defaults>
</compile_context>

<pallas_src>
import functools
import re

import jax
import jax.numpy as jnp
from jax.experimental import pallas as pl
from jax.experimental.pallas import tpu as pltpu


def _round_up(x, m):
    return ((x + m - 1) // m) * m


def _cdiv(a, b):
    return -(-a // b)


def _tpu_info():
    """(vmem_capacity_bytes, generation) with defensive fallbacks."""
    gen = 6
    try:
        kind = str(getattr(jax.devices()[0], "device_kind", "") or "")
        m = re.search(r"(\d+)", kind)
        if m:
            gen = int(m.group(1))
    except Exception:
        pass
    vmem_cap = (64 << 20) if gen >= 7 else (128 << 20)
    try:
        info = pltpu.get_tpu_info()
        vmem_cap = int(getattr(info, "vmem_capacity_bytes", vmem_cap))
    except Exception:
        pass
    return vmem_cap, gen


# ---------------------------------------------------------------------------
# Pallas kernels
# ---------------------------------------------------------------------------
def _conv_mm_kernel_direct(p_ref, w_ref, b_ref, o_ref, *, apply_relu):
    """Single K step: out = relu(p @ w + b), f32 epilogue, bf16 store."""
    out = jnp.dot(p_ref[...], w_ref[...], preferred_element_type=jnp.float32)
    out = out + b_ref[...]
    if apply_relu:
        out = jnp.maximum(out, 0.0)
    o_ref[...] = out.astype(o_ref.dtype)


def _conv_mm_kernel_acc(p_ref, w_ref, b_ref, o_ref, acc_ref, *, apply_relu):
    """K-tiled: f32 VMEM accumulator, bias+ReLU fused into final K step."""
    k = pl.program_id(2)

    @pl.when(k == 0)
    def _():
        acc_ref[...] = jnp.zeros_like(acc_ref)

    acc_ref[...] += jnp.dot(p_ref[...], w_ref[...],
                            preferred_element_type=jnp.float32)

    @pl.when(k == pl.num_programs(2) - 1)
    def _():
        out = acc_ref[...] + b_ref[...]
        if apply_relu:
            out = jnp.maximum(out, 0.0)
        o_ref[...] = out.astype(o_ref.dtype)


# ---------------------------------------------------------------------------
# Tiled matmul driver: (M, K) @ (K, OC) + bias, fused ReLU, bf16 output.
# ---------------------------------------------------------------------------
def _conv_matmul(patches, w_mat, bias, *, apply_relu):
    M, K = patches.shape
    OC = w_mat.shape[1]

    vmem_cap, gen = _tpu_info()
    # VMEM working-set budget for the double-buffered tiles.
    budget = (24 << 20) if vmem_cap <= (64 << 20) else (64 << 20)

    # N (OC) tile: 256 for the 256-wide MXUs (v6e/v7x), 128 otherwise; always
    # a multiple of 128 so output stores are lane-dense (full-width vst).
    tn_target = 256 if gen >= 6 else 128
    tn = min(tn_target, _round_up(OC, 128))
    OC_pad = _round_up(OC, tn)

    def m_tiles(tm_target):
        if M <= tm_target:
            return M, M                       # full-extent block, no M pad
        n = _cdiv(M, tm_target)
        tm = _round_up(_cdiv(M, n), 16)       # 16: bf16 sublane packing
        return tm, tm * n

    def footprint(tm, tk, multi_k):
        f = (2 * tm * tk * 2      # patches double-buffer (bf16)
             + 2 * tk * tn * 2    # weights double-buffer (bf16)
             + 2 * tn * 4         # bias (f32)
             + 2 * tm * tn * 2)   # output double-buffer (bf16)
        if multi_k:
            f += tm * tn * 4      # f32 accumulator scratch
        return f

    # Prefer a single full-extent K step (no K padding, no scratch) when the
    # working set fits; otherwise fall back to K tiling.
    plan = None
    for tm_target in (1024, 512, 256):
        tm, M_pad = m_tiles(tm_target)
        if footprint(tm, K, False) <= budget:
            plan = (tm, M_pad, K, K, False)
            break
    if plan is None:
        for tm_target in (1024, 512, 256, 128):
            tm, M_pad = m_tiles(tm_target)
            for tk_nom in (512, 256):
                n_k = _cdiv(K, tk_nom)
                tk = _round_up(_cdiv(K, n_k), 128)
                if footprint(tm, tk, True) <= budget:
                    plan = (tm, M_pad, tk, tk * n_k, True)
                    break
            if plan is not None:
                break
    if plan is None:  # last resort
        tm, M_pad = m_tiles(128)
        plan = (tm, M_pad, 128, _round_up(K, 128), True)

    tm, M_pad, tk, K_pad, multi_k = plan

    # Pad only when needed (the common small-conv case needs none for M/K).
    if (M_pad, K_pad) != (M, K):
        patches = jnp.pad(patches, ((0, M_pad - M), (0, K_pad - K)))
    if (K_pad, OC_pad) != (K, OC):
        w_mat = jnp.pad(w_mat, ((0, K_pad - K), (0, OC_pad - OC)))
    bias2d = bias.astype(jnp.float32)
    if OC_pad != OC:
        bias2d = jnp.pad(bias2d, (0, OC_pad - OC))
    bias2d = bias2d.reshape(1, OC_pad)

    n_i = M_pad // tm
    n_j = OC_pad // tn

    fp = footprint(tm, tk, multi_k)
    vmem_limit = max(32 << 20, int(fp * 1.4) + (8 << 20))
    vmem_limit = min(vmem_limit, (vmem_cap * 3) // 4)

    cost = pl.CostEstimate(
        flops=2 * M_pad * K_pad * OC_pad,
        transcendentals=0,
        bytes_accessed=(M_pad * K_pad * 2 * n_j + K_pad * OC_pad * 2 * n_i
                        + OC_pad * 4 * n_i + M_pad * OC_pad * 2),
    )

    if multi_k:
        grid = (n_i, n_j, K_pad // tk)
        kernel = functools.partial(_conv_mm_kernel_acc, apply_relu=apply_relu)
        in_specs = [
            pl.BlockSpec((tm, tk), lambda i, j, k: (i, k)),   # patches
            pl.BlockSpec((tk, tn), lambda i, j, k: (k, j)),   # weights
            pl.BlockSpec((1, tn), lambda i, j, k: (0, j)),    # bias
        ]
        out_spec = pl.BlockSpec((tm, tn), lambda i, j, k: (i, j))
        scratch = [pltpu.VMEM((tm, tn), jnp.float32)]
        sem = ("parallel", "parallel", "arbitrary")
    else:
        grid = (n_i, n_j)
        kernel = functools.partial(_conv_mm_kernel_direct, apply_relu=apply_relu)
        in_specs = [
            pl.BlockSpec((tm, tk), lambda i, j: (i, 0)),      # patches
            pl.BlockSpec((tk, tn), lambda i, j: (0, j)),      # weights
            pl.BlockSpec((1, tn), lambda i, j: (0, j)),       # bias
        ]
        out_spec = pl.BlockSpec((tm, tn), lambda i, j: (i, j))
        scratch = []
        sem = ("parallel", "parallel")

    out = pl.pallas_call(
        kernel,
        out_shape=jax.ShapeDtypeStruct((M_pad, OC_pad), jnp.bfloat16),
        grid_spec=pltpu.PrefetchScalarGridSpec(
            num_scalar_prefetch=0,
            grid=grid,
            in_specs=in_specs,
            out_specs=out_spec,
            scratch_shapes=scratch,
        ),
        compiler_params=pltpu.CompilerParams(
            dimension_semantics=sem,
            vmem_limit_bytes=vmem_limit,
        ),
        cost_estimate=cost,
    )(patches, w_mat, bias2d)

    return out[:M, :OC]


# ---------------------------------------------------------------------------
# Conv2d module equivalent (forward only)
# ---------------------------------------------------------------------------
def conv2d_forward(x, weight, bias, *, stride=1, same_padding=False,
                   relu=True, kernel_size=None):
    """x: (N, C, H, W); weight: (OC, C, KH, KW); bias: (OC,). Returns NCHW."""
    N, C, H, W = x.shape
    OC, _, KH, KW = weight.shape
    if kernel_size is None:
        kernel_size = KH
    # Matches the PyTorch module exactly: padding = int((kernel_size-1)/2).
    padding = (kernel_size - 1) // 2 if same_padding else 0
    s = stride

    # One layout conversion up front: NCHW -> NHWC, cast to bf16 HERE so all
    # downstream im2col glue (taps / stack / reshape / optional pad) is built
    # once, in bf16.
    x_nhwc = jnp.transpose(x, (0, 2, 3, 1)).astype(jnp.bfloat16)
    if padding > 0:
        x_nhwc = jnp.pad(
            x_nhwc, ((0, 0), (padding, padding), (padding, padding), (0, 0)))
    Hp, Wp = x_nhwc.shape[1], x_nhwc.shape[2]
    OH = (Hp - KH) // s + 1
    OW = (Wp - KW) // s + 1

    # im2col in NHWC / (kh, kw, c) order — matches weight.transpose(2,3,1,0).
    taps = []
    for kh in range(KH):
        for kw in range(KW):
            taps.append(x_nhwc[:, kh:kh + s * OH:s, kw:kw + s * OW:s, :])
    patches = jnp.stack(taps, axis=3)                    # (N, OH, OW, KH*KW, C)
    patches = patches.reshape(N * OH * OW, KH * KW * C)  # (M, K) bf16

    w_mat = jnp.transpose(weight, (2, 3, 1, 0)).reshape(KH * KW * C, OC)
    w_mat = w_mat.astype(jnp.bfloat16)

    out = _conv_matmul(patches, w_mat, bias, apply_relu=relu)

    # Slice + reshape + transpose + cast back to the module's NCHW/x.dtype
    # interface (fused by XLA into ~one pass).
    out = out.reshape(N, OH, OW, OC).transpose(0, 3, 1, 2)
    return out.astype(x.dtype)


# ---------------------------------------------------------------------------
if __name__ == "__main__":
    key = jax.random.PRNGKey(0)
    k_x, k_w, k_b = jax.random.split(key, 3)

    # Module config: Conv2d(in_channels=4, out_channels=8, kernel_size=3,
    #                       stride=1, relu=True, same_padding=False, bn=False)
    N, C, H, W = 2, 4, 16, 16
    OC, KS, STRIDE = 8, 3, 1

    x = jax.random.normal(k_x, (N, C, H, W), dtype=jnp.float32)
    fan_in = C * KS * KS
    weight = jax.random.normal(k_w, (OC, C, KS, KS), dtype=jnp.float32) / jnp.sqrt(fan_in)
    bias = jax.random.normal(k_b, (OC,), dtype=jnp.float32) * 0.1

    y = conv2d_forward(x, weight, bias, stride=STRIDE,
                       same_padding=False, relu=True, kernel_size=KS)
    y = jax.block_until_ready(y)

    # Reference with the same bf16-operand / f32-accumulate numerics.
    ref = jax.lax.conv_general_dilated(
        x.astype(jnp.bfloat16), weight.astype(jnp.bfloat16),
        window_strides=(STRIDE, STRIDE), padding="VALID",
        dimension_numbers=("NCHW", "OIHW", "NCHW"),
        preferred_element_type=jnp.float32)
    ref = jnp.maximum(ref + bias.reshape(1, OC, 1, 1), 0.0)

    assert y.shape == (N, OC, H - KS + 1, W - KS + 1), y.shape
    # Kernel stores bf16 activations (halves writeback traffic), so compare at
    # a bf16-appropriate tolerance.
    err = float(jnp.max(jnp.abs(y - ref)))
    assert jnp.allclose(y, ref, atol=2e-2, rtol=2e-2), err

    print("KERNEL_OK")
</pallas_src>

<mosaic_0001>
module attributes {stable_mosaic.version = 11 : i64} {
  func.func @_conv_mm_kernel_direct(%arg0: i32, %arg1: i32, %arg2: memref<392x36xbf16, #tpu.memory_space<vmem>>, %arg3: memref<36x128xbf16, #tpu.memory_space<vmem>>, %arg4: memref<1x128xf32, #tpu.memory_space<vmem>>, %arg5: memref<392x128xbf16, #tpu.memory_space<vmem>>) attributes {dimension_semantics = [#tpu.dimension_semantics<parallel>, #tpu.dimension_semantics<parallel>], iteration_bounds = array<i64: 1, 1>, scalar_prefetch = 0 : i64, scratch_operands = 0 : i64, tpu.core_type = #tpu.core_type<tc>, window_params = [{transform_indices = @transform_0, window_bounds = array<i64: 392, 36>}, {transform_indices = @transform_1, window_bounds = array<i64: 36, 128>}, {transform_indices = @transform_2, window_bounds = array<i64: 1, 128>}, {transform_indices = @transform_3, window_bounds = array<i64: 392, 128>}]} {
    %c0 = arith.constant 0 : index
    %c0_0 = arith.constant 0 : index
    %0 = vector.load %arg2[%c0, %c0_0] : memref<392x36xbf16, #tpu.memory_space<vmem>>, vector<392x36xbf16>
    %c0_1 = arith.constant 0 : index
    %c0_2 = arith.constant 0 : index
    %1 = vector.load %arg3[%c0_1, %c0_2] : memref<36x128xbf16, #tpu.memory_space<vmem>>, vector<36x128xbf16>
    %cst = arith.constant dense<0.000000e+00> : vector<392x128xf32>
    %2 = tpu.matmul %0, %1, %cst {dimension_numbers = #tpu.dot_dimension_numbers<[1], [0], [0], [1], [0, 0, 1, 1], [], []>} : vector<392x36xbf16>, vector<36x128xbf16>, vector<392x128xf32> -> vector<392x128xf32>
    %c0_3 = arith.constant 0 : index
    %c0_4 = arith.constant 0 : index
    %3 = vector.load %arg4[%c0_3, %c0_4] : memref<1x128xf32, #tpu.memory_space<vmem>>, vector<1x128xf32>
    %4 = vector.broadcast %3 : vector<1x128xf32> to vector<392x128xf32>
    %5 = arith.addf %2, %4 : vector<392x128xf32>
    %cst_5 = arith.constant 0.000000e+00 : f32
    %6 = vector.broadcast %cst_5 : f32 to vector<392x128xf32>
    %7 = arith.maximumf %5, %6 : vector<392x128xf32>
    %8 = arith.truncf %7 : vector<392x128xf32> to vector<392x128xbf16>
    %c0_6 = arith.constant 0 : index
    %c0_7 = arith.constant 0 : index
    %9 = vector.load %arg5[%c0_6, %c0_7] : memref<392x128xbf16, #tpu.memory_space<vmem>>, vector<392x128xbf16>
    tpu.vector_store %arg5[%c0_6, %c0_7], %8 {strides = array<i32>} : memref<392x128xbf16, #tpu.memory_space<vmem>>, vector<392x128xbf16>,
    return
  }
  func.func @transform_0(%arg0: i32, %arg1: i32) -> (i32, i32) {
    %c0_i32 = arith.constant 0 : i32
    %c0_i32_0 = arith.constant 0 : i32
    return %arg0, %c0_i32 : i32, i32
  }
  func.func @transform_1(%arg0: i32, %arg1: i32) -> (i32, i32) {
    %c0_i32 = arith.constant 0 : i32
    %c0_i32_0 = arith.constant 0 : i32
    return %c0_i32, %arg1 : i32, i32
  }
  func.func @transform_2(%arg0: i32, %arg1: i32) -> (i32, i32) {
    %c0_i32 = arith.constant 0 : i32
    %c0_i32_0 = arith.constant 0 : i32
    return %c0_i32, %arg1 : i32, i32
  }
  func.func @transform_3(%arg0: i32, %arg1: i32) -> (i32, i32) {
    %c0_i32 = arith.constant 0 : i32
    return %arg0, %arg1 : i32, i32
  }
}

</mosaic_0001>

<bundles_post_ra>
// kernel: tpu_custom_call.1
= control target key start
LH: loop header
LB: loop body
LE: loop exit
PB: predicated region body
PF: predicated region fallthrough
CT: control target
= control target key end

     0   :  { %v1330_v1 = vmov 0.0   ;;  %vm291_vm0 = vcmask 1041408   ;;  %vm1331_vm1 = vmmov 0   ;;  %vm215_vm2 = vcmask 293888   ;;  %s1586_s0 = inlined_call_operand.vmem [shape: bf16[392,36], index: 0, kind: input, shape index: {}]   ;;  %s1587_s1 = inlined_call_operand.vmem [shape: bf16[36,128], index: 1, kind: input, shape index: {}]   ;;  %s1588_s2 = inlined_call_operand.vmem [shape: f32[1,128], index: 2, kind: input, shape index: {}]   ;;  %s1589_s3 = inlined_call_operand.hbm [shape: bf16[392,128], index: 3, kind: output, shape index: {}]  }
   0x1   :  { %v1278_v0 = vld [vmem:[%s1587_s1] sm:$0xff]   ;;  %1161 = vmatprep.subr.bf16.mxu0 %v1330_v1  ;;  %v1279_v2 = vld [vmem:[%s1587_s1 + $0x8] sm:$0xff]   ;;  %1267 = vmatprep.subr.bf16.mxu1 %v1330_v1  ;;  %v1280_v3 = vld [vmem:[%s1587_s1 + $0x10] ss:$0 sps:$4 sm:$0x33]  }
   0x2   :  { %1162 = vmatpush3.bf16.msra.mxu0 %v1278_v0  ;;  %1270 = vmatpush3.bf16.msra.mxu1 %v1278_v0  ;;  %v293_v4 = vsel %vm291_vm0, %v1280_v3, 0  ;;  %v1281_v5 = vld [vmem:[%s1586_s0] sm:$0xff]   ;;  %v1282_v6 = vld [vmem:[%s1586_s0 + $0x68] sm:$0xff]   ;;  %v1284_v8 = vld [vmem:[%s1586_s0 + $0x70] sm:$0xff]  }
   0x3   :  { %1163 = vmatprep.subr.bf16.mxu0 %v1330_v1  ;;  %1268 = vmatprep.subr.bf16.mxu1 %v1330_v1  ;;  %v1283_v7 = vld [vmem:[%s1586_s0 + $0x8] sm:$0xff]   ;;  %v1285_v9 = vld [vmem:[%s1586_s0 + $0x10] sm:$0xff]   ;;  %v1286_v10 = vld [vmem:[%s1586_s0 + $0x78] sm:$0xff]  }
   0x4   :  { %1167 = vmatprep.mubr.msk.bf16.mxu0 %vm1331_vm1, %v1330_v1  ;;  %1219 = vmatprep.mubr.msk.bf16.mxu1 %vm1331_vm1, %v1330_v1 }
   0x6   :  { %1164 = vmatpush3.bf16.msra.mxu0 %v1279_v2  ;;  %1271 = vmatpush3.bf16.msra.mxu1 %v1279_v2 }
   0x7   :  { %1165 = vmatprep.subr.bf16.mxu0 %v1330_v1  ;;  %1269 = vmatprep.subr.bf16.mxu1 %v1330_v1 }
   0xa   :  { %1166 = vmatpush3.bf16.msra.mxu0 %v293_v4  ;;  %1272 = vmatpush3.bf16.msra.mxu1 %v293_v4 }
   0xd   :  { %1168 = vmatmul.mubr.msk.bf16.vlgmr.msra.gmra.mrb[0].mxu0 %vm215_vm2, %v1281_v5  ;;  %1220 = vmatmul.mubr.msk.bf16.vlgmr.msra.gmra.mrb[0].mxu1 %vm215_vm2, %v1282_v6 }
   0xe   :  { %1171 = vmatprep.mubr.msk.bf16.mxu0 %vm1331_vm1, %v1330_v1  ;;  %1223 = vmatprep.mubr.msk.bf16.mxu1 %vm1331_vm1, %v1330_v1 }
  0x15   :  { %1172 = vmatmul.mubr.msk.bf16.gmra.mrb[4].mxu0 %vm215_vm2, %v1283_v7  ;;  %1224 = vmatmul.mubr.msk.bf16.gmra.mrb[4].mxu1 %vm215_vm2, %v1284_v8 }
  0x16   :  { %1175 = vmatprep.mubr.msk.bf16.mxu0 %vm1331_vm1, %v1330_v1  ;;  %1227 = vmatprep.mubr.msk.bf16.mxu1 %vm1331_vm1, %v1330_v1 }
  0x17   :  { %8 = vsyncpa [#allocation3], 0  ;;  %v1287_v11 = vld [vmem:[%s1586_s0 + $0x18] sm:$0xff]   ;;  %v1288_v12 = vld [vmem:[%s1586_s0 + $0x80] sm:$0xff]  }
  0x18   :  { %v1289_v13 = vld [vmem:[%s1586_s0 + $0x20] sm:$0xff]   ;;  %v1290_v14 = vld [vmem:[%s1586_s0 + $0x88] sm:$0xff]   ;;  %v1292_v16 = vld [vmem:[%s1586_s0 + $0x90] sm:$0xff]  }
  0x19   :  { %v1291_v15 = vld [vmem:[%s1586_s0 + $0x28] sm:$0xff]   ;;  %v1293_v17 = vld [vmem:[%s1586_s0 + $0x30] sm:$0xff]   ;;  %v1294_v18 = vld [vmem:[%s1586_s0 + $0x98] sm:$0xff]  }
  0x1a   :  { %v1295_v19 = vld [vmem:[%s1586_s0 + $0x38] sm:$0xff]   ;;  %v1296_v20 = vld [vmem:[%s1586_s0 + $0xa0] sm:$0xff]   ;;  %v1298_v22 = vld [vmem:[%s1586_s0 + $0xa8] sm:$0xff]  }
  0x1b   :  { %v1297_v21 = vld [vmem:[%s1586_s0 + $0x40] sm:$0xff]   ;;  %v1299_v23 = vld [vmem:[%s1586_s0 + $0x48] sm:$0xff]   ;;  %v1300_v24 = vld [vmem:[%s1586_s0 + $0xb0] sm:$0xff]  }
  0x1c   :  { %v1301_v25 = vld [vmem:[%s1586_s0 + $0x50] sm:$0xff]   ;;  %v1302_v26 = vld [vmem:[%s1586_s0 + $0xb8] sm:$0xff]   ;;  %v1304_v28 = vld [vmem:[%s1586_s0 + $0xc0] ss:$0 sps:$4 sm:$0xff]  }
  0x1d   :  { %1176 = vmatmul.mubr.msk.bf16.gmra.mrb[8].mxu0 %vm215_vm2, %v1285_v9  ;;  %1228 = vmatmul.mubr.msk.bf16.gmra.mrb[8].mxu1 %vm215_vm2, %v1286_v10  ;;  %v1303_v27 = vld [vmem:[%s1586_s0 + $0x58] sm:$0xff]   ;;  %v1305_v29 = vld [vmem:[%s1586_s0 + $0x60] sm:$0xff]   ;;  %s1332_s0 = smov [#allocation2]  }
  0x1e   :  { %1179 = vmatprep.mubr.msk.bf16.mxu0 %vm1331_vm1, %v1330_v1  ;;  %1231 = vmatprep.mubr.msk.bf16.mxu1 %vm1331_vm1, %v1330_v1  ;;  %v1523_v30 = vld [vmem:[%s1588_s2] ss:$0 sm:$0xff]  ;;  %s827_s2 = sshll.u32 %s1332_s0, 4  ;;  %s828_s2 = int_to_ptr.vmem [resolvable:$true] %s827_s2 }
  0x1f   :  { %s1306_s14 = scalar_lea.vmem %s828_s2, 3136  ;;  %p1311_p1 = scmp.lt.s32.totalorder %s828_s2, %s828_s2 }
  0x20   :  { %p1307_p0 = scmp.ne.s32.totalorder %s828_s2, %s1306_s14  ;;  %p1312_p2 = scmp.lt.s32.totalorder %s1306_s14, %s1306_s14 }
  0x22   :  { %p1313_p3 = por %p1312_p2, %p1311_p1 }
  0x24   :  { %p1314_p4 = pnand %p1313_p3, %p1307_p0 }
  0x25   :  { %1180 = vmatmul.mubr.msk.bf16.gmra.mrb[12].mxu0 %vm215_vm2, %v1287_v11  ;;  %1232 = vmatmul.mubr.msk.bf16.gmra.mrb[12].mxu1 %vm215_vm2, %v1288_v12 }
  0x26   :  { %1183 = vmatprep.mubr.msk.bf16.mxu0 %vm1331_vm1, %v1330_v1  ;;  %1235 = vmatprep.mubr.msk.bf16.mxu1 %vm1331_vm1, %v1330_v1 }
  0x2d   :  { %1184 = vmatmul.mubr.msk.bf16.gmra.mrb[16].mxu0 %vm215_vm2, %v1289_v13  ;;  %1236 = vmatmul.mubr.msk.bf16.gmra.mrb[16].mxu1 %vm215_vm2, %v1290_v14 }
  0x2e   :  { %1187 = vmatprep.mubr.msk.bf16.mxu0 %vm1331_vm1, %v1330_v1  ;;  %1239 = vmatprep.mubr.msk.bf16.mxu1 %vm1331_vm1, %v1330_v1 }
  0x35   :  { %1188 = vmatmul.mubr.msk.bf16.gmra.mrb[20].mxu0 %vm215_vm2, %v1291_v15  ;;  %1240 = vmatmul.mubr.msk.bf16.gmra.mrb[20].mxu1 %vm215_vm2, %v1292_v16 }
  0x36   :  { %1191 = vmatprep.mubr.msk.bf16.mxu0 %vm1331_vm1, %v1330_v1  ;;  %1243 = vmatprep.mubr.msk.bf16.mxu1 %vm1331_vm1, %v1330_v1 }
  0x3d   :  { %1192 = vmatmul.mubr.msk.bf16.gmra.mrb[24].mxu0 %vm215_vm2, %v1293_v17  ;;  %1244 = vmatmul.mubr.msk.bf16.gmra.mrb[24].mxu1 %vm215_vm2, %v1294_v18 }
  0x3e   :  { %1195 = vmatprep.mubr.msk.bf16.mxu0 %vm1331_vm1, %v1330_v1  ;;  %1247 = vmatprep.mubr.msk.bf16.mxu1 %vm1331_vm1, %v1330_v1 }
  0x45   :  { %1196 = vmatmul.mubr.msk.bf16.gmra.mrb[28].mxu0 %vm215_vm2, %v1295_v19  ;;  %1248 = vmatmul.mubr.msk.bf16.gmra.mrb[28].mxu1 %vm215_vm2, %v1296_v20 }
  0x46   :  { %1199 = vmatprep.mubr.msk.bf16.mxu0 %vm1331_vm1, %v1330_v1  ;;  %1251 = vmatprep.mubr.msk.bf16.mxu1 %vm1331_vm1, %v1330_v1 }
  0x4d   :  { %1200 = vmatmul.mubr.msk.bf16.gmra.mrb[32].mxu0 %vm215_vm2, %v1297_v21  ;;  %1252 = vmatmul.mubr.msk.bf16.gmra.mrb[32].mxu1 %vm215_vm2, %v1298_v22 }
  0x4e   :  { %1203 = vmatprep.mubr.msk.bf16.mxu0 %vm1331_vm1, %v1330_v1  ;;  %1255 = vmatprep.mubr.msk.bf16.mxu1 %vm1331_vm1, %v1330_v1 }
  0x55   :  { %1204 = vmatmul.mubr.msk.bf16.gmra.mrb[36].mxu0 %vm215_vm2, %v1299_v23  ;;  %1256 = vmatmul.mubr.msk.bf16.gmra.mrb[36].mxu1 %vm215_vm2, %v1300_v24 }
  0x56   :  { %1207 = vmatprep.mubr.msk.bf16.mxu0 %vm1331_vm1, %v1330_v1  ;;  %1259 = vmatprep.mubr.msk.bf16.mxu1 %vm1331_vm1, %v1330_v1 }
  0x5d   :  { %1208 = vmatmul.mubr.msk.bf16.gmra.mrb[40].mxu0 %vm215_vm2, %v1301_v25  ;;  %1260 = vmatmul.mubr.msk.bf16.gmra.mrb[40].mxu1 %vm215_vm2, %v1302_v26 }
  0x5e   :  { %1211 = vmatprep.mubr.msk.bf16.mxu0 %vm1331_vm1, %v1330_v1  ;;  %1263 = vmatprep.mubr.msk.bf16.mxu1 %vm1331_vm1, %v1330_v1 }
  0x65   :  { %1212 = vmatmul.mubr.msk.bf16.gmra.mrb[44].mxu0 %vm215_vm2, %v1303_v27  ;;  %1264 = vmatmul.mubr.msk.bf16.gmra.mrb[44].mxu1 %vm215_vm2, %v1304_v28 }
  0x66   :  { %1215 = vmatprep.mubr.msk.bf16.mxu0 %vm1331_vm1, %v1330_v1 }
  0x6d   :  { %1216 = vmatmul.mubr.msk.bf16.gmra.mrb[48].mxu0 %vm215_vm2, %v1305_v29 }
  0xe0   :  { %v329_v31 = vpop.f32.mrb[0].mxu0  ;;  %v433_v32 = vpop.f32.mrb[0].mxu1 }
  0xe1   :  { %v330_v33 = vadd.f32 %v1523_v30, %v329_v31  ;;  %v1169_v34 = vpop.f32.mrb[1].mxu0  ;;  %v434_v35 = vadd.f32 %v1523_v30, %v433_v32  ;;  %v1221_v36 = vpop.f32.mrb[1].mxu1 }
  0xe2   :  { %v332_v37 = vpop.f32.mrb[2].mxu0  ;;  %v436_v38 = vpop.f32.mrb[2].mxu1 }
  0xe3   :  { %v333_v39 = vadd.f32 %v1523_v30, %v332_v37  ;;  %v1170_v40 = vpop.f32.mrb[3].mxu0  ;;  %v553_v41 = vmax.f32 %v434_v35, 0.0  ;;  %v437_v42 = vadd.f32 %v1523_v30, %v436_v38  ;;  %v1222_v43 = vpop.f32.mrb[3].mxu1  ;;  %v527_v44 = vmax.f32 %v330_v33, 0.0 }
  0xe5   :  { %v528_v45 = vmax.f32 %v333_v39, 0.0  ;;  %v554_v46 = vmax.f32 %v437_v42, 0.0 }
  0xe7   :  { %v993_v47 = vpack.c.bf16 %v528_v45, %v527_v44  ;;  %v1058_v48 = vpack.c.bf16 %v554_v46, %v553_v41 }
  0xe8   :  { %v337_v49 = vpop.f32.mrb[4].mxu0  ;;  %v441_v50 = vpop.f32.mrb[4].mxu1 }
  0xe9   :  { %994 = vst [vmem:[#allocation2] sm:$0xff] %v993_v47   ;;  %v338_v51 = vadd.f32 %v1523_v30, %v337_v49  ;;  %v1173_v52 = vpop.f32.mrb[5].mxu0  ;;  %1122 = vst [vmem:[#allocation2 + $0x68] sm:$0xff] %v1058_v48   ;;  %v442_v53 = vadd.f32 %v1523_v30, %v441_v50  ;;  %v1225_v54 = vpop.f32.mrb[5].mxu1 }
  0xea   :  { %v340_v55 = vpop.f32.mrb[6].mxu0  ;;  %v444_v56 = vpop.f32.mrb[6].mxu1 }
  0xeb   :  { %v341_v57 = vadd.f32 %v1523_v30, %v340_v55  ;;  %v1174_v58 = vpop.f32.mrb[7].mxu0  ;;  %v555_v59 = vmax.f32 %v442_v53, 0.0  ;;  %v445_v60 = vadd.f32 %v1523_v30, %v444_v56  ;;  %v1226_v61 = vpop.f32.mrb[7].mxu1  ;;  %v529_v62 = vmax.f32 %v338_v51, 0.0 }
  0xed   :  { %v530_v63 = vmax.f32 %v341_v57, 0.0  ;;  %v556_v0 = vmax.f32 %v445_v60, 0.0 }
  0xef   :  { %v998_v1 = vpack.c.bf16 %v530_v63, %v529_v62  ;;  %v1063_v2 = vpack.c.bf16 %v556_v0, %v555_v59 }
  0xf0   :  { %v345_v3 = vpop.f32.mrb[8].mxu0  ;;  %v449_v4 = vpop.f32.mrb[8].mxu1 }
  0xf1   :  { %1110 = vst [vmem:[#allocation2 + $0x8] sm:$0xff] %v998_v1   ;;  %v346_v5 = vadd.f32 %v1523_v30, %v345_v3  ;;  %v1177_v6 = vpop.f32.mrb[9].mxu0  ;;  %1123 = vst [vmem:[#allocation2 + $0x70] sm:$0xff] %v1063_v2   ;;  %v450_v7 = vadd.f32 %v1523_v30, %v449_v4  ;;  %v1229_v8 = vpop.f32.mrb[9].mxu1 }
  0xf2   :  { %v348_v9 = vpop.f32.mrb[10].mxu0  ;;  %v452_v10 = vpop.f32.mrb[10].mxu1 }
  0xf3   :  { %v349_v11 = vadd.f32 %v1523_v30, %v348_v9  ;;  %v1178_v12 = vpop.f32.mrb[11].mxu0  ;;  %v557_v13 = vmax.f32 %v450_v7, 0.0  ;;  %v453_v14 = vadd.f32 %v1523_v30, %v452_v10  ;;  %v1230_v15 = vpop.f32.mrb[11].mxu1  ;;  %v531_v16 = vmax.f32 %v346_v5, 0.0 }
  0xf5   :  { %v532_v17 = vmax.f32 %v349_v11, 0.0  ;;  %v558_v18 = vmax.f32 %v453_v14, 0.0 }
  0xf7   :  { %v1003_v19 = vpack.c.bf16 %v532_v17, %v531_v16  ;;  %v1068_v20 = vpack.c.bf16 %v558_v18, %v557_v13 }
  0xf8   :  { %v353_v21 = vpop.f32.mrb[12].mxu0  ;;  %v457_v22 = vpop.f32.mrb[12].mxu1 }
  0xf9   :  { %1111 = vst [vmem:[#allocation2 + $0x10] sm:$0xff] %v1003_v19   ;;  %v354_v23 = vadd.f32 %v1523_v30, %v353_v21  ;;  %v1181_v24 = vpop.f32.mrb[13].mxu0  ;;  %1124 = vst [vmem:[#allocation2 + $0x78] sm:$0xff] %v1068_v20   ;;  %v458_v25 = vadd.f32 %v1523_v30, %v457_v22  ;;  %v1233_v26 = vpop.f32.mrb[13].mxu1 }
  0xfa   :  { %v356_v27 = vpop.f32.mrb[14].mxu0  ;;  %v460_v28 = vpop.f32.mrb[14].mxu1 }
  0xfb   :  { %v357_v29 = vadd.f32 %v1523_v30, %v356_v27  ;;  %v1182_v31 = vpop.f32.mrb[15].mxu0  ;;  %v559_v32 = vmax.f32 %v458_v25, 0.0  ;;  %v461_v33 = vadd.f32 %v1523_v30, %v460_v28  ;;  %v1234_v34 = vpop.f32.mrb[15].mxu1  ;;  %v533_v35 = vmax.f32 %v354_v23, 0.0 }
  0xfd   :  { %v534_v36 = vmax.f32 %v357_v29, 0.0  ;;  %v560_v37 = vmax.f32 %v461_v33, 0.0 }
  0xff   :  { %v1008_v38 = vpack.c.bf16 %v534_v36, %v533_v35  ;;  %v1073_v39 = vpack.c.bf16 %v560_v37, %v559_v32 }
 0x100   :  { %v361_v40 = vpop.f32.mrb[16].mxu0  ;;  %v465_v41 = vpop.f32.mrb[16].mxu1 }
 0x101   :  { %1112 = vst [vmem:[#allocation2 + $0x18] sm:$0xff] %v1008_v38   ;;  %v362_v42 = vadd.f32 %v1523_v30, %v361_v40  ;;  %v1185_v43 = vpop.f32.mrb[17].mxu0  ;;  %1125 = vst [vmem:[#allocation2 + $0x80] sm:$0xff] %v1073_v39   ;;  %v466_v44 = vadd.f32 %v1523_v30, %v465_v41  ;;  %v1237_v45 = vpop.f32.mrb[17].mxu1 }
 0x102   :  { %v364_v46 = vpop.f32.mrb[18].mxu0  ;;  %v468_v47 = vpop.f32.mrb[18].mxu1 }
 0x103   :  { %v365_v48 = vadd.f32 %v1523_v30, %v364_v46  ;;  %v1186_v49 = vpop.f32.mrb[19].mxu0  ;;  %v561_v50 = vmax.f32 %v466_v44, 0.0  ;;  %v469_v51 = vadd.f32 %v1523_v30, %v468_v47  ;;  %v1238_v52 = vpop.f32.mrb[19].mxu1  ;;  %v535_v53 = vmax.f32 %v362_v42, 0.0 }
 0x105   :  { %v536_v54 = vmax.f32 %v365_v48, 0.0  ;;  %v562_v55 = vmax.f32 %v469_v51, 0.0 }
 0x107   :  { %v1013_v56 = vpack.c.bf16 %v536_v54, %v535_v53  ;;  %v1078_v57 = vpack.c.bf16 %v562_v55, %v561_v50 }
 0x108   :  { %v369_v58 = vpop.f32.mrb[20].mxu0  ;;  %v473_v59 = vpop.f32.mrb[20].mxu1 }
 0x109   :  { %1113 = vst [vmem:[#allocation2 + $0x20] sm:$0xff] %v1013_v56   ;;  %v370_v60 = vadd.f32 %v1523_v30, %v369_v58  ;;  %v1189_v61 = vpop.f32.mrb[21].mxu0  ;;  %1126 = vst [vmem:[#allocation2 + $0x88] sm:$0xff] %v1078_v57   ;;  %v474_v62 = vadd.f32 %v1523_v30, %v473_v59  ;;  %v1241_v63 = vpop.f32.mrb[21].mxu1 }
 0x10a   :  { %v372_v0 = vpop.f32.mrb[22].mxu0  ;;  %v476_v1 = vpop.f32.mrb[22].mxu1 }
 0x10b   :  { %v373_v2 = vadd.f32 %v1523_v30, %v372_v0  ;;  %v1190_v3 = vpop.f32.mrb[23].mxu0  ;;  %v563_v4 = vmax.f32 %v474_v62, 0.0  ;;  %v477_v5 = vadd.f32 %v1523_v30, %v476_v1  ;;  %v1242_v6 = vpop.f32.mrb[23].mxu1  ;;  %v537_v7 = vmax.f32 %v370_v60, 0.0 }
 0x10d   :  { %v538_v8 = vmax.f32 %v373_v2, 0.0  ;;  %v564_v9 = vmax.f32 %v477_v5, 0.0 }
 0x10f   :  { %v1018_v10 = vpack.c.bf16 %v538_v8, %v537_v7  ;;  %v1083_v11 = vpack.c.bf16 %v564_v9, %v563_v4 }
 0x110   :  { %v377_v12 = vpop.f32.mrb[24].mxu0  ;;  %v481_v13 = vpop.f32.mrb[24].mxu1 }
 0x111   :  { %1114 = vst [vmem:[#allocation2 + $0x28] sm:$0xff] %v1018_v10   ;;  %v378_v14 = vadd.f32 %v1523_v30, %v377_v12  ;;  %v1193_v15 = vpop.f32.mrb[25].mxu0  ;;  %1127 = vst [vmem:[#allocation2 + $0x90] sm:$0xff] %v1083_v11   ;;  %v482_v16 = vadd.f32 %v1523_v30, %v481_v13  ;;  %v1245_v17 = vpop.f32.mrb[25].mxu1 }
 0x112   :  { %v380_v18 = vpop.f32.mrb[26].mxu0  ;;  %v484_v19 = vpop.f32.mrb[26].mxu1 }
 0x113   :  { %v381_v20 = vadd.f32 %v1523_v30, %v380_v18  ;;  %v1194_v21 = vpop.f32.mrb[27].mxu0  ;;  %v565_v22 = vmax.f32 %v482_v16, 0.0  ;;  %v485_v23 = vadd.f32 %v1523_v30, %v484_v19  ;;  %v1246_v24 = vpop.f32.mrb[27].mxu1  ;;  %v539_v25 = vmax.f32 %v378_v14, 0.0 }
 0x115   :  { %v540_v26 = vmax.f32 %v381_v20, 0.0  ;;  %v566_v27 = vmax.f32 %v485_v23, 0.0 }
 0x117   :  { %v1023_v28 = vpack.c.bf16 %v540_v26, %v539_v25  ;;  %v1088_v29 = vpack.c.bf16 %v566_v27, %v565_v22 }
 0x118   :  { %v385_v31 = vpop.f32.mrb[28].mxu0  ;;  %v489_v32 = vpop.f32.mrb[28].mxu1 }
 0x119   :  { %1115 = vst [vmem:[#allocation2 + $0x30] sm:$0xff] %v1023_v28   ;;  %v386_v33 = vadd.f32 %v1523_v30, %v385_v31  ;;  %v1197_v34 = vpop.f32.mrb[29].mxu0  ;;  %1128 = vst [vmem:[#allocation2 + $0x98] sm:$0xff] %v1088_v29   ;;  %v490_v35 = vadd.f32 %v1523_v30, %v489_v32  ;;  %v1249_v36 = vpop.f32.mrb[29].mxu1 }
 0x11a   :  { %v388_v37 = vpop.f32.mrb[30].mxu0  ;;  %v492_v38 = vpop.f32.mrb[30].mxu1 }
 0x11b   :  { %v389_v39 = vadd.f32 %v1523_v30, %v388_v37  ;;  %v1198_v40 = vpop.f32.mrb[31].mxu0  ;;  %v567_v41 = vmax.f32 %v490_v35, 0.0  ;;  %v493_v42 = vadd.f32 %v1523_v30, %v492_v38  ;;  %v1250_v43 = vpop.f32.mrb[31].mxu1  ;;  %v541_v44 = vmax.f32 %v386_v33, 0.0 }
 0x11d   :  { %v542_v45 = vmax.f32 %v389_v39, 0.0  ;;  %v568_v46 = vmax.f32 %v493_v42, 0.0 }
 0x11f   :  { %v1028_v47 = vpack.c.bf16 %v542_v45, %v541_v44  ;;  %v1093_v48 = vpack.c.bf16 %v568_v46, %v567_v41 }
 0x120   :  { %v393_v49 = vpop.f32.mrb[32].mxu0  ;;  %v497_v50 = vpop.f32.mrb[32].mxu1 }
 0x121   :  { %1116 = vst [vmem:[#allocation2 + $0x38] sm:$0xff] %v1028_v47   ;;  %v394_v51 = vadd.f32 %v1523_v30, %v393_v49  ;;  %v1201_v52 = vpop.f32.mrb[33].mxu0  ;;  %1129 = vst [vmem:[#allocation2 + $0xa0] sm:$0xff] %v1093_v48   ;;  %v498_v53 = vadd.f32 %v1523_v30, %v497_v50  ;;  %v1253_v54 = vpop.f32.mrb[33].mxu1 }
 0x122   :  { %v396_v55 = vpop.f32.mrb[34].mxu0  ;;  %v500_v56 = vpop.f32.mrb[34].mxu1 }
 0x123   :  { %v397_v57 = vadd.f32 %v1523_v30, %v396_v55  ;;  %v1202_v58 = vpop.f32.mrb[35].mxu0  ;;  %v569_v59 = vmax.f32 %v498_v53, 0.0  ;;  %v501_v60 = vadd.f32 %v1523_v30, %v500_v56  ;;  %v1254_v61 = vpop.f32.mrb[35].mxu1  ;;  %v543_v62 = vmax.f32 %v394_v51, 0.0 }
 0x125   :  { %v544_v63 = vmax.f32 %v397_v57, 0.0  ;;  %v570_v0 = vmax.f32 %v501_v60, 0.0 }
 0x127   :  { %v1033_v1 = vpack.c.bf16 %v544_v63, %v543_v62  ;;  %v1098_v2 = vpack.c.bf16 %v570_v0, %v569_v59 }
 0x128   :  { %v401_v3 = vpop.f32.mrb[36].mxu0  ;;  %v505_v4 = vpop.f32.mrb[36].mxu1 }
 0x129   :  { %1117 = vst [vmem:[#allocation2 + $0x40] sm:$0xff] %v1033_v1   ;;  %v402_v5 = vadd.f32 %v1523_v30, %v401_v3  ;;  %v1205_v6 = vpop.f32.mrb[37].mxu0  ;;  %1130 = vst [vmem:[#allocation2 + $0xa8] sm:$0xff] %v1098_v2   ;;  %v506_v7 = vadd.f32 %v1523_v30, %v505_v4  ;;  %v1257_v8 = vpop.f32.mrb[37].mxu1 }
 0x12a   :  { %v404_v9 = vpop.f32.mrb[38].mxu0  ;;  %v508_v10 = vpop.f32.mrb[38].mxu1 }
 0x12b   :  { %v405_v11 = vadd.f32 %v1523_v30, %v404_v9  ;;  %v1206_v12 = vpop.f32.mrb[39].mxu0  ;;  %v571_v13 = vmax.f32 %v506_v7, 0.0  ;;  %v509_v14 = vadd.f32 %v1523_v30, %v508_v10  ;;  %v1258_v15 = vpop.f32.mrb[39].mxu1  ;;  %v545_v16 = vmax.f32 %v402_v5, 0.0 }
 0x12d   :  { %v546_v17 = vmax.f32 %v405_v11, 0.0  ;;  %v572_v18 = vmax.f32 %v509_v14, 0.0 }
 0x12f   :  { %v1038_v19 = vpack.c.bf16 %v546_v17, %v545_v16  ;;  %v1103_v20 = vpack.c.bf16 %v572_v18, %v571_v13 }
 0x130   :  { %v409_v21 = vpop.f32.mrb[40].mxu0  ;;  %v513_v22 = vpop.f32.mrb[40].mxu1 }
 0x131   :  { %1118 = vst [vmem:[#allocation2 + $0x48] sm:$0xff] %v1038_v19   ;;  %v410_v23 = vadd.f32 %v1523_v30, %v409_v21  ;;  %v1209_v24 = vpop.f32.mrb[41].mxu0  ;;  %1131 = vst [vmem:[#allocation2 + $0xb0] sm:$0xff] %v1103_v20   ;;  %v514_v25 = vadd.f32 %v1523_v30, %v513_v22  ;;  %v1261_v26 = vpop.f32.mrb[41].mxu1 }
 0x132   :  { %v412_v27 = vpop.f32.mrb[42].mxu0  ;;  %v516_v28 = vpop.f32.mrb[42].mxu1 }
 0x133   :  { %v413_v29 = vadd.f32 %v1523_v30, %v412_v27  ;;  %v1210_v31 = vpop.f32.mrb[43].mxu0  ;;  %v573_v32 = vmax.f32 %v514_v25, 0.0  ;;  %v517_v33 = vadd.f32 %v1523_v30, %v516_v28  ;;  %v1262_v34 = vpop.f32.mrb[43].mxu1  ;;  %v547_v35 = vmax.f32 %v410_v23, 0.0 }
 0x135   :  { %v548_v36 = vmax.f32 %v413_v29, 0.0  ;;  %v574_v37 = vmax.f32 %v517_v33, 0.0 }
 0x137   :  { %v1043_v38 = vpack.c.bf16 %v548_v36, %v547_v35  ;;  %v1108_v39 = vpack.c.bf16 %v574_v37, %v573_v32 }
 0x138   :  { %v417_v40 = vpop.f32.mrb[44].mxu0  ;;  %v521_v41 = vpop.f32.mrb[44].mxu1 }
 0x139   :  { %1119 = vst [vmem:[#allocation2 + $0x50] sm:$0xff] %v1043_v38   ;;  %v418_v42 = vadd.f32 %v1523_v30, %v417_v40  ;;  %v1213_v43 = vpop.f32.mrb[45].mxu0  ;;  %1132 = vst [vmem:[#allocation2 + $0xb8] sm:$0xff] %v1108_v39   ;;  %v522_v44 = vadd.f32 %v1523_v30, %v521_v41  ;;  %v1265_v45 = vpop.f32.mrb[45].mxu1 }
 0x13a   :  { %v420_v46 = vpop.f32.mrb[46].mxu0  ;;  %v524_v47 = vpop.f32.mrb[46].mxu1 }
 0x13b   :  { %v421_v48 = vadd.f32 %v1523_v30, %v420_v46  ;;  %v1214_v49 = vpop.f32.mrb[47].mxu0  ;;  %v575_v50 = vmax.f32 %v522_v44, 0.0  ;;  %v1266_v51 = vpop.f32.mrb[47].mxu1  ;;  %v549_v52 = vmax.f32 %v418_v42, 0.0 }
 0x13d   :  { %v550_v53 = vmax.f32 %v421_v48, 0.0  ;;  %v989_v54 = vpack.c.bf16 %v575_v50, %v575_v50 }
 0x13f   :  { %v1048_v55 = vpack.c.bf16 %v550_v53, %v549_v52  ;;  %821 = vst [vmem:[#allocation2 + $0xc0] sm:$0xf] %v989_v54 }
 0x140   :  { %v425_v56 = vpop.f32.mrb[48].mxu0 }
 0x141   :  { %1120 = vst [vmem:[#allocation2 + $0x58] sm:$0xff] %v1048_v55   ;;  %v426_v57 = vadd.f32 %v1523_v30, %v425_v56  ;;  %v1217_v58 = vpop.f32.mrb[49].mxu0 }
 0x142   :  { %v428_v59 = vpop.f32.mrb[50].mxu0 }
 0x143   :  { %v429_v60 = vadd.f32 %v1523_v30, %v428_v59  ;;  %v1218_v61 = vpop.f32.mrb[51].mxu0  ;;  %v551_v62 = vmax.f32 %v426_v57, 0.0 }
 0x145   :  { %v552_v63 = vmax.f32 %v429_v60, 0.0 }
 0x147   :  { %v1053_v0 = vpack.c.bf16 %v552_v63, %v551_v62 }
 0x149   :  { %1121 = vst [vmem:[#allocation2 + $0x60] sm:$0xff] %v1053_v0  }
 0x14a   :  { %1317 = shalt.err (!%p1314_p4)
}
 0x14b   :  { %s1318_s17 = scalar_lea.hbm %s1589_s3, 3136 }
 0x14c   :  { %p1319_p5 = scmp.ne.s32.totalorder %s1589_s3, %s1318_s17  ;;  %p1322_p6 = scmp.lt.u32.totalorder %s1318_s17, %s1589_s3 }
 0x14e   :  { %p1324_p7 = pnand %p1322_p6, %p1319_p5 }
 0x150   :  { %1327 = shalt.err (!%p1324_p7)
}
 0x151   :  { %s1333_s21 = smov 64   ;;  %s1334_s22 = smov 4  }
 0x152   :  { %833 = dma.vmem_to_hbm [thread:$0]  %s828_s2, 3136, %s1589_s3, [#allocation3], %s1333_s21, %s1333_s21, %s1334_s22  }
 0x153   :  { %1328 = dma.done.wait [#allocation3], 3136  }
 0x154   :  { %1329 = vsyncadd [#allocation3], 4294964160 }
 0x155   :  { %837 = vsyncpa [#allocation3], 1 }

</bundles_post_ra>
